<compile_context>
chip_gen: v7x
topology: tpu7x:2x2x1
jax: 0.10.0
libtpu: 0.0.40
codegen_flags: <defaults>
</compile_context>

<pallas_src>
import functools

import jax
import jax.numpy as jnp
from jax.experimental import pallas as pl
from jax.experimental.pallas import tpu as pltpu


def _spatial_tiling(hw: int, c: int, itemsize: int,
                    max_spatial_tile=None, target_block_bytes=2 << 20):
    """Pick (tile, num_tiles, needs_mask) for the H*W axis.

    The tile is either the full extent (always layout-legal) or a multiple of
    128 sized so one x block stays within ~target_block_bytes of VMEM.
    """
    cap = (target_block_bytes // max(1, c * itemsize)) // 128 * 128
    cap = max(128, cap)
    if max_spatial_tile is not None:
        cap = max(128, min(cap, (max_spatial_tile // 128) * 128))
    if hw <= cap:
        return hw, 1, False                     # single full-extent block
    ts = cap                                    # multiple of 128
    num_t = pl.cdiv(hw, ts)
    return ts, num_t, (hw % ts) != 0


def _channel_attention_kernel(x_ref, w1_ref, w2_ref, o_ref,
                              sum_sc, max_sc, *, inv_hw, hw, ts, needs_mask):
    # x_ref : (1, C, ts)   one batch element, ts spatial positions on lanes
    # w1_ref: (Cm, C)      fc1 weight (Conv2d(C, Cm, 1, bias=False) reshaped)
    # w2_ref: (C, Cm)      fc2 weight (Conv2d(Cm, C, 1, bias=False) reshaped)
    # o_ref : (1, C, 1)    sigmoid(channel attention), f32
    # sum_sc, max_sc: (C, 1) f32 running spatial sum / max
    t = pl.program_id(1)

    @pl.when(t == 0)
    def _init():
        sum_sc[...] = jnp.zeros_like(sum_sc)
        max_sc[...] = jnp.full_like(max_sc, -jnp.inf)

    x = x_ref[0].astype(jnp.float32)                            # (C, ts)
    if needs_mask:
        # Tail tile may extend past H*W; out-of-bounds lanes hold garbage.
        lane = jax.lax.broadcasted_iota(jnp.int32, x.shape, dimension=1)
        valid = (t * ts + lane) < hw
        x_sum = jnp.where(valid, x, 0.0)
        x_max = jnp.where(valid, x, -jnp.inf)
    else:
        x_sum = x
        x_max = x

    sum_sc[...] += jnp.sum(x_sum, axis=-1, keepdims=True)       # lane reduce
    max_sc[...] = jnp.maximum(max_sc[...],
                              jnp.max(x_max, axis=-1, keepdims=True))

    @pl.when(t == pl.num_programs(1) - 1)
    def _finalize():
        avg = sum_sc[...] * inv_hw                              # (C, 1)
        mx = max_sc[...]                                        # (C, 1)

        def fc1_relu(p):                                        # (C,1)->(Cm,1)
            h = jnp.dot(w1_ref[...], p,
                        preferred_element_type=jnp.float32)
            return jnp.maximum(h, 0.0)

        # fc2 is linear: fc2(relu(fc1(avg))) + fc2(relu(fc1(mx)))
        #              = fc2(relu(fc1(avg)) + relu(fc1(mx)))
        hidden = fc1_relu(avg) + fc1_relu(mx)                   # (Cm, 1)
        logits = jnp.dot(w2_ref[...], hidden,
                         preferred_element_type=jnp.float32)    # (C, 1)
        o_ref[0] = (1.0 / (1.0 + jnp.exp(-logits))).astype(o_ref.dtype)


def channel_attention(x_nchw, w1, w2, *, max_spatial_tile=None):
    """x_nchw: (N,C,H,W) f32/bf16; w1: (Cm,C); w2: (C,Cm).  Returns (N,C,1,1) f32."""
    N, C, H, W = x_nchw.shape
    Cm = w1.shape[0]
    assert w1.shape == (Cm, C) and w2.shape == (C, Cm)
    hw = H * W
    ts, num_t, needs_mask = _spatial_tiling(
        hw, C, jnp.dtype(x_nchw.dtype).itemsize, max_spatial_tile)

    x = x_nchw.reshape(N, C, hw)          # contiguous (free) reshape of NCHW
    w1f = w1.astype(jnp.float32)
    w2f = w2.astype(jnp.float32)

    kernel = functools.partial(_channel_attention_kernel,
                               inv_hw=1.0 / hw, hw=hw, ts=ts,
                               needs_mask=needs_mask)

    out = pl.pallas_call(
        kernel,
        out_shape=jax.ShapeDtypeStruct((N, C, 1), jnp.float32),
        grid_spec=pltpu.PrefetchScalarGridSpec(
            num_scalar_prefetch=0,
            grid=(N, num_t),
            in_specs=[
                pl.BlockSpec((1, C, ts), lambda n, t: (n, 0, t)),
                pl.BlockSpec((Cm, C), lambda n, t: (0, 0)),
                pl.BlockSpec((C, Cm), lambda n, t: (0, 0)),
            ],
            out_specs=pl.BlockSpec((1, C, 1), lambda n, t: (n, 0, 0)),
            scratch_shapes=[
                pltpu.VMEM((C, 1), jnp.float32),   # running spatial sum
                pltpu.VMEM((C, 1), jnp.float32),   # running spatial max
            ],
        ),
        compiler_params=pltpu.CompilerParams(
            dimension_semantics=("parallel", "arbitrary")),
    )(x, w1f, w2f)
    return out.reshape(N, C, 1, 1)


# ---------------------------------------------------------------------------
# Pure-JAX reference (PyTorch ChannelAttention semantics) for the sanity check.
# ---------------------------------------------------------------------------
def channel_attention_ref(x_nchw, w1, w2):
    N, C, H, W = x_nchw.shape
    x = x_nchw.astype(jnp.float32).reshape(N, C, H * W)
    avg = jnp.mean(x, axis=-1)                       # (N, C)
    mx = jnp.max(x, axis=-1)                         # (N, C)

    def mlp(p):
        h = jnp.maximum(jnp.dot(p, w1.T), 0.0)       # (N, Cm)
        return jnp.dot(h, w2.T)                      # (N, C)

    out = jax.nn.sigmoid(mlp(avg) + mlp(mx))
    return out.reshape(N, C, 1, 1)


if __name__ == "__main__":
    # ChannelAttention(in_planes=64): hidden = in_planes // 16 = 4.
    N, C, H, W = 2, 64, 16, 16
    Cm = C // 16

    key = jax.random.PRNGKey(0)
    kx, k1, k2 = jax.random.split(key, 3)
    x = jax.random.normal(kx, (N, C, H, W), jnp.float32)
    # Conv2d(C, Cm, 1, bias=False).weight -> (Cm, C); Conv2d(Cm, C, 1) -> (C, Cm)
    w1 = 0.05 * jax.random.normal(k1, (Cm, C), jnp.float32)
    w2 = 0.05 * jax.random.normal(k2, (C, Cm), jnp.float32)

    # f32 path (exact module semantics).
    out = jax.block_until_ready(channel_attention(x, w1, w2))
    ref = jax.block_until_ready(channel_attention_ref(x, w1, w2))
    assert out.shape == (N, C, 1, 1), out.shape
    assert jnp.allclose(out, ref, atol=2e-3, rtol=2e-3), \
        float(jnp.max(jnp.abs(out - ref)))

    # Ragged spatial extent (exercises the masked tail-tile path: hw=169, ts=128).
    x2 = jax.random.normal(kx, (N, C, 13, 13), jnp.float32)
    out2 = jax.block_until_ready(
        channel_attention(x2, w1, w2, max_spatial_tile=128))
    ref2 = channel_attention_ref(x2, w1, w2)
    assert jnp.allclose(out2, ref2, atol=2e-3, rtol=2e-3), \
        float(jnp.max(jnp.abs(out2 - ref2)))

    # bf16 activation path (recommended for v6e/v7x): same kernel, f32 accum.
    x_bf16 = x.astype(jnp.bfloat16)
    out_bf = jax.block_until_ready(channel_attention(x_bf16, w1, w2))
    ref_bf = channel_attention_ref(x_bf16.astype(jnp.float32), w1, w2)
    assert jnp.allclose(out_bf, ref_bf, atol=2e-3, rtol=2e-3), \
        float(jnp.max(jnp.abs(out_bf - ref_bf)))

    print("KERNEL_OK")
</pallas_src>

<mosaic_0001>
module attributes {stable_mosaic.version = 11 : i64} {
  func.func @_channel_attention_kernel(%arg0: i32, %arg1: i32, %arg2: memref<1x64x256xf32, #tpu.memory_space<vmem>>, %arg3: memref<4x64xf32, #tpu.memory_space<vmem>>, %arg4: memref<64x4xf32, #tpu.memory_space<vmem>>, %arg5: memref<1x64x1xf32, #tpu.memory_space<vmem>>, %arg6: memref<64x1xf32, #tpu.memory_space<vmem>>, %arg7: memref<64x1xf32, #tpu.memory_space<vmem>>) attributes {dimension_semantics = [#tpu.dimension_semantics<parallel>, #tpu.dimension_semantics<arbitrary>], iteration_bounds = array<i64: 2, 1>, scalar_prefetch = 0 : i64, scratch_operands = 2 : i64, tpu.core_type = #tpu.core_type<tc>, window_params = [{transform_indices = @transform_0, window_bounds = array<i64: 1, 64, 256>}, {pipeline_mode = #tpu.pipeline_mode<synchronous>, transform_indices = @transform_1, window_bounds = array<i64: 4, 64>}, {pipeline_mode = #tpu.pipeline_mode<synchronous>, transform_indices = @transform_2, window_bounds = array<i64: 64, 4>}, {transform_indices = @transform_3, window_bounds = array<i64: 1, 64, 1>}]} {
    %c0_i32 = arith.constant 0 : i32
    %0 = arith.cmpi eq, %arg1, %c0_i32 : i32
    %1 = arith.extui %0 : i1 to i32
    %c0_i32_0 = arith.constant 0 : i32
    %2 = arith.cmpi ne, %1, %c0_i32_0 : i32
    scf.if %2 {
      %cst_14 = arith.constant 0.000000e+00 : f32
      %18 = vector.broadcast %cst_14 : f32 to vector<64x1xf32>
      %c0_15 = arith.constant 0 : index
      %c0_16 = arith.constant 0 : index
      %19 = vector.load %arg6[%c0_15, %c0_16] : memref<64x1xf32, #tpu.memory_space<vmem>>, vector<64x1xf32>
      tpu.vector_store %arg6[%c0_15, %c0_16], %18 {strides = array<i32>} : memref<64x1xf32, #tpu.memory_space<vmem>>, vector<64x1xf32>,
      %cst_17 = arith.constant 0xFF800000 : f32
      %20 = vector.broadcast %cst_17 : f32 to vector<64x1xf32>
      %c0_18 = arith.constant 0 : index
      %c0_19 = arith.constant 0 : index
      %21 = vector.load %arg7[%c0_18, %c0_19] : memref<64x1xf32, #tpu.memory_space<vmem>>, vector<64x1xf32>
      tpu.vector_store %arg7[%c0_18, %c0_19], %20 {strides = array<i32>} : memref<64x1xf32, #tpu.memory_space<vmem>>, vector<64x1xf32>,
    } else {
    }
    %c0 = arith.constant 0 : index
    %c0_1 = arith.constant 0 : index
    %c0_2 = arith.constant 0 : index
    %3 = vector.load %arg2[%c0, %c0_1, %c0_2] : memref<1x64x256xf32, #tpu.memory_space<vmem>>, vector<1x64x256xf32>
    %4 = vector.shape_cast %3 : vector<1x64x256xf32> to vector<64x256xf32>
    %c0_3 = arith.constant 0 : index
    %c0_4 = arith.constant 0 : index
    %5 = vector.load %arg6[%c0_3, %c0_4] : memref<64x1xf32, #tpu.memory_space<vmem>>, vector<64x1xf32>
    %cst = arith.constant dense<0.000000e+00> : vector<64xf32>
    %6 = vector.multi_reduction <add>, %4, %cst [1] : vector<64x256xf32> to vector<64xf32>
    %7 = vector.shape_cast %6 : vector<64xf32> to vector<64x1xf32>
    %8 = arith.addf %5, %7 : vector<64x1xf32>
    %c0_5 = arith.constant 0 : index
    %c0_6 = arith.constant 0 : index
    %9 = vector.load %arg6[%c0_5, %c0_6] : memref<64x1xf32, #tpu.memory_space<vmem>>, vector<64x1xf32>
    tpu.vector_store %arg6[%c0_5, %c0_6], %8 {strides = array<i32>} : memref<64x1xf32, #tpu.memory_space<vmem>>, vector<64x1xf32>,
    %c0_7 = arith.constant 0 : index
    %c0_8 = arith.constant 0 : index
    %10 = vector.load %arg7[%c0_7, %c0_8] : memref<64x1xf32, #tpu.memory_space<vmem>>, vector<64x1xf32>
    %cst_9 = arith.constant dense<0xFF800000> : vector<64xf32>
    %11 = vector.multi_reduction <maximumf>, %4, %cst_9 [1] : vector<64x256xf32> to vector<64xf32>
    %12 = vector.shape_cast %11 : vector<64xf32> to vector<64x1xf32>
    %13 = arith.maximumf %10, %12 : vector<64x1xf32>
    %c0_10 = arith.constant 0 : index
    %c0_11 = arith.constant 0 : index
    %14 = vector.load %arg7[%c0_10, %c0_11] : memref<64x1xf32, #tpu.memory_space<vmem>>, vector<64x1xf32>
    tpu.vector_store %arg7[%c0_10, %c0_11], %13 {strides = array<i32>} : memref<64x1xf32, #tpu.memory_space<vmem>>, vector<64x1xf32>,
    %c0_i32_12 = arith.constant 0 : i32
    %15 = arith.cmpi eq, %arg1, %c0_i32_12 : i32
    %16 = arith.extui %15 : i1 to i32
    %c0_i32_13 = arith.constant 0 : i32
    %17 = arith.cmpi ne, %16, %c0_i32_13 : i32
    scf.if %17 {
      %c0_14 = arith.constant 0 : index
      %c0_15 = arith.constant 0 : index
      %18 = vector.load %arg6[%c0_14, %c0_15] : memref<64x1xf32, #tpu.memory_space<vmem>>, vector<64x1xf32>
      %cst_16 = arith.constant 3.906250e-03 : f32
      %19 = vector.broadcast %cst_16 : f32 to vector<64x1xf32>
      %20 = arith.mulf %18, %19 : vector<64x1xf32>
      %c0_17 = arith.constant 0 : index
      %c0_18 = arith.constant 0 : index
      %21 = vector.load %arg7[%c0_17, %c0_18] : memref<64x1xf32, #tpu.memory_space<vmem>>, vector<64x1xf32>
      %c0_19 = arith.constant 0 : index
      %c0_20 = arith.constant 0 : index
      %22 = vector.load %arg3[%c0_19, %c0_20] : memref<4x64xf32, #tpu.memory_space<vmem>>, vector<4x64xf32>
      %cst_21 = arith.constant dense<0.000000e+00> : vector<4x1xf32>
      %23 = tpu.matmul %22, %20, %cst_21 {dimension_numbers = #tpu.dot_dimension_numbers<[1], [0], [0], [1], [0, 0, 1, 1], [], []>} : vector<4x64xf32>, vector<64x1xf32>, vector<4x1xf32> -> vector<4x1xf32>
      %cst_22 = arith.constant 0.000000e+00 : f32
      %24 = vector.broadcast %cst_22 : f32 to vector<4x1xf32>
      %25 = arith.maximumf %23, %24 : vector<4x1xf32>
      %c0_23 = arith.constant 0 : index
      %c0_24 = arith.constant 0 : index
      %26 = vector.load %arg3[%c0_23, %c0_24] : memref<4x64xf32, #tpu.memory_space<vmem>>, vector<4x64xf32>
      %cst_25 = arith.constant dense<0.000000e+00> : vector<4x1xf32>
      %27 = tpu.matmul %26, %21, %cst_25 {dimension_numbers = #tpu.dot_dimension_numbers<[1], [0], [0], [1], [0, 0, 1, 1], [], []>} : vector<4x64xf32>, vector<64x1xf32>, vector<4x1xf32> -> vector<4x1xf32>
      %cst_26 = arith.constant 0.000000e+00 : f32
      %28 = vector.broadcast %cst_26 : f32 to vector<4x1xf32>
      %29 = arith.maximumf %27, %28 : vector<4x1xf32>
      %30 = arith.addf %25, %29 : vector<4x1xf32>
      %c0_27 = arith.constant 0 : index
      %c0_28 = arith.constant 0 : index
      %31 = vector.load %arg4[%c0_27, %c0_28] : memref<64x4xf32, #tpu.memory_space<vmem>>, vector<64x4xf32>
      %cst_29 = arith.constant dense<0.000000e+00> : vector<64x1xf32>
      %32 = tpu.matmul %31, %30, %cst_29 {dimension_numbers = #tpu.dot_dimension_numbers<[1], [0], [0], [1], [0, 0, 1, 1], [], []>} : vector<64x4xf32>, vector<4x1xf32>, vector<64x1xf32> -> vector<64x1xf32>
      %cst_30 = arith.constant 0.000000e+00 : f32
      %33 = vector.broadcast %cst_30 : f32 to vector<64x1xf32>
      %34 = arith.subf %33, %32 : vector<64x1xf32>
      %35 = math.exp %34 : vector<64x1xf32>
      %cst_31 = arith.constant 1.000000e+00 : f32
      %36 = vector.broadcast %cst_31 : f32 to vector<64x1xf32>
      %37 = arith.addf %36, %35 : vector<64x1xf32>
      %cst_32 = arith.constant 1.000000e+00 : f32
      %38 = vector.broadcast %cst_32 : f32 to vector<64x1xf32>
      %39 = arith.divf %38, %37 : vector<64x1xf32>
      %c0_33 = arith.constant 0 : index
      %c0_34 = arith.constant 0 : index
      %c0_35 = arith.constant 0 : index
      %40 = vector.load %arg5[%c0_33, %c0_34, %c0_35] : memref<1x64x1xf32, #tpu.memory_space<vmem>>, vector<1x64x1xf32>
      %41 = vector.shape_cast %40 : vector<1x64x1xf32> to vector<64x1xf32>
      %42 = vector.shape_cast %39 : vector<64x1xf32> to vector<1x64x1xf32>
      tpu.vector_store %arg5[%c0_33, %c0_34, %c0_35], %42 {strides = array<i32>} : memref<1x64x1xf32, #tpu.memory_space<vmem>>, vector<1x64x1xf32>,
    } else {
    }
    return
  }
  func.func @transform_0(%arg0: i32, %arg1: i32) -> (i32, i32, i32) {
    %c0_i32 = arith.constant 0 : i32
    %c0_i32_0 = arith.constant 0 : i32
    return %arg0, %c0_i32, %arg1 : i32, i32, i32
  }
  func.func @transform_1(%arg0: i32, %arg1: i32) -> (i32, i32) {
    %c0_i32 = arith.constant 0 : i32
    %c0_i32_0 = arith.constant 0 : i32
    %c0_i32_1 = arith.constant 0 : i32
    return %c0_i32, %c0_i32_0 : i32, i32
  }
  func.func @transform_2(%arg0: i32, %arg1: i32) -> (i32, i32) {
    %c0_i32 = arith.constant 0 : i32
    %c0_i32_0 = arith.constant 0 : i32
    %c0_i32_1 = arith.constant 0 : i32
    return %c0_i32, %c0_i32_0 : i32, i32
  }
  func.func @transform_3(%arg0: i32, %arg1: i32) -> (i32, i32, i32) {
    %c0_i32 = arith.constant 0 : i32
    %c0_i32_0 = arith.constant 0 : i32
    %c0_i32_1 = arith.constant 0 : i32
    return %arg0, %c0_i32, %c0_i32_0 : i32, i32, i32
  }
}

</mosaic_0001>

<bundles_post_ra>
// kernel: tpu_custom_call.1
= control target key start
LH: loop header
LB: loop body
LE: loop exit
PB: predicated region body
PF: predicated region fallthrough
CT: control target
= control target key end

     0   :  { %8 = vsyncpa [#allocation5], 0  ;;  %s1351_s0 = inlined_call_operand.hbm [shape: f32[2,64,256], index: 0, kind: input, shape index: {}]   ;;  %s1352_s1 = inlined_call_operand.vmem [shape: f32[4,64], index: 1, kind: input, shape index: {}]   ;;  %s1353_s2 = inlined_call_operand.vmem [shape: f32[64,4], index: 2, kind: input, shape index: {}]   ;;  %s1354_s3 = inlined_call_operand.vmem [shape: f32[2,64,1], index: 3, kind: output, shape index: {}]  }
   0x1   :  { %10 = vsyncpa [#allocation5 + $0x1], 0  ;;  %s1126_s12 = smov 0   ;;  %s1128_s13 = smov 0  }
   0x2   :  { %s1130_s14 = smov 0   ;;  %s1132_s15 = smov 0  }
   0x3   :  { %s1134_s16 = smov 0   ;;  %s1136_s17 = smov 0  }
   0x4 LB: > { %s793_s18 = sadd.s32 4294967295, %s1097_s17   ;;  %s28_s19 = sadd.s32 1, %s1093_s16  ;;  %s1097_s17 = sphi %s1136_s17, %s16_s17   ;;  %s1093_s16 = sphi %s1134_s16, %s1362_s16   ;;  %s1089_s15 = sphi %s1132_s15, %s1361_s15   ;;  %s1085_s14 = sphi %s1130_s14, %s1360_s14   ;;  %s1081_s13 = sphi %s1128_s13, %s1359_s13   ;;  %s1077_s12 = sphi %s1126_s12, %s1358_s12  }
   0x5   : > { %p30_p0 = scmp.ge.s32.totalorder %s28_s19, 2  ;;  %s37_s20 = sadd.s32 1, %s1085_s14 }
   0x6   : > { %p44_p1 = scmp.ne.s32.totalorder %s1085_s14, %s1081_s13  ;;  %p45_p2 = scmp.eq.s32.totalorder %s1097_s17, 0 }
   0x7   : > { %s1364_s19 = smov (%p30_p0, %s28_s19), 0  ;;  %p50_p4 = scmp.ne.s32.totalorder %s1081_s13, %s1077_s12 }
   0x8   : > { %p1162_p3 = por %p45_p2, %p44_p1  ;;  %s32_s22 = ssub.s32 %s1093_s16, %s1364_s19 }
   0x9   : > { %p51_p5 = scmp.eq.s32.totalorder %s793_s18, 0  ;;  %p35_p6 = scmp.eq.s32.totalorder %s32_s22, 0 }
   0xa   : > { %p930_p8 = scmp.lt.s32.totalorder %s1097_s17, 2  ;;  %s148_s25 = sand.u32 1, %s1085_s14  }
   0xb   : > { %p1169_p7 = por %p51_p5, %p50_p4  ;;  %s817_s26 = sshll.u32 %s1093_s16, 11 }
   0xc   : > { %s1175_s24 = scalar_select %p35_p6, %s1085_s14, %s37_s20  }
   0xd   : > { %s797_s27 = sshll.u32 %s148_s25, 7  ;;  %s1182_s30 = scalar_lea.hbm %s1351_s0, %s817_s26 }
   0xe   : > { %s152_s4 = scalar_lea.vmem [#allocation4], %s797_s27  ;;  %p1186_p9 = pnand %p930_p8, %p1162_p3 }
   0xf   : > { %s161_s5 = sshll.u32 %s152_s4, 4  ;;  %s1192_s7 = scalar_lea.sflag [#allocation5], %s148_s25  ;;  %s1190_s5 = int_to_ptr.vmem [resolvable:$true] %s161_s5 }
  0x10   : > { %s1017_s8 = scalar_lea.hbm %s1182_s30, 2048  ;;  %p1019_p11 = pneg %p1186_p9 }
  0x11   : > { %p1018_p10 = scmp.ne.s32.totalorder %s1182_s30, %s1017_s8  ;;  %s1022_s11 = scalar_lea.hbm %s1351_s0, 4096 }
  0x12   : > { %p1023_p0 = scmp.lt.u32.totalorder %s1182_s30, %s1351_s0  ;;  %p1024_p1 = scmp.lt.u32.totalorder %s1022_s11, %s1017_s8 }
  0x13   : > { %p1020_p12 = pnand %p1019_p11, %p1018_p10  ;;  %p1026_p3 = scmp.lt.u32.totalorder %s1017_s8, %s1182_s30 }
  0x14   : > { %p1025_p2 = por %p1024_p1, %p1023_p0 }
  0x15   : > { %p1021_p13 = pneg %p1020_p12 }
  0x16   : > { %p1027_p4 = por %p1026_p3, %p1025_p2 }
  0x18   : > { %p1028_p5 = pnand %p1027_p4, %p1021_p13 }
  0x1a   : > { %1031 = shalt.err (!%p1028_p5)
}
  0x1b   : > { %s1032_s20 = scalar_lea.vmem %s1190_s5, 2048  ;;  %s1099_s21 = smov [#allocation4]  }
  0x1c   : > { %p1033_p6 = scmp.ne.s32.totalorder %s1190_s5, %s1032_s20  ;;  %s1037_s22 = sshll.u32 %s1099_s21, 4  ;;  %s1038_s22 = int_to_ptr.vmem [resolvable:$false] %s1037_s22 }
  0x1d   : > { %s1039_s25 = scalar_lea.vmem %s1038_s22, 4096  ;;  %p1040_p12 = scmp.lt.s32.totalorder %s1190_s5, %s1038_s22 }
  0x1e   : > { %p1035_p8 = pnand %p1033_p6, %p1019_p11  ;;  %p1041_p0 = scmp.lt.s32.totalorder %s1039_s25, %s1032_s20 }
  0x20   : > { %p1036_p10 = pneg %p1035_p8  ;;  %p1042_p1 = por %p1041_p0, %p1040_p12 }
  0x22   : > { %p1043_p2 = pnand %p1042_p1, %p1036_p10 }
  0x24   : > { %1046 = shalt.err (!%p1043_p2)
}
  0x25   : > { %s1100_s26 = smov 256   ;;  %s1101_s27 = smov 16  }
  0x26   : > { %929 = dma.hbm_to_vmem [thread:$0]  (!%p1186_p9), %s1182_s30, 2048, %s1190_s5, %s1192_s7, %s1100_s26, %s1100_s26, %s1101_s27  }
  0x27   : > { %p800_p11 = scmp.ge.s32.totalorder %s1097_s17, 1  ;;  %p169_p13 = scmp.lt.s32.totalorder %s1097_s17, 3 }
  0x29   : > { %p170_p3 = pnand %p800_p11, %p169_p13 }
  0x2a   : > { %s175_s28 = sand.u32 (!%p170_p3), 1, %s1081_s13  }
  0x2b   : > { %173 = sbr.rel (%p170_p3) target bundleno = 705 (0x2c1), region = 32  ;;  %s801_s29 = sshll.u32 (!%p170_p3), %s175_s28, 7 }
  0x2c   : > { %s176_s4 = scalar_lea.sflag (!%p170_p3), [#allocation5], %s175_s28  ;;  %s1223_s8 = scalar_lea.vmem (!%p170_p3), [#allocation4], %s801_s29 }
  0x32   : > { %1072 = dma.done.wait (%p1169_p7), %s176_s4, 2048  }
  0x33   : > { %1074 = vsyncadd (%p1169_p7), %s176_s4, 4294965248  ;;  %vm212_vm0 = vcmask 7168   ;;  %v1102_v0 = vmov -inf   ;;  %v229_v1 = vld [vmem:[%s1223_s8] sm:$0xff]  ;;  %v230_v2 = vld [vmem:[%s1223_s8 + $0x8] sm:$0xff]  ;;  %v1103_v15 = vmov 0.0  }
  0x34   : > { %221 = vst.msk [vmem:[#allocation3] sm:$0xff] %vm212_vm0, %v1102_v0  ;;  %222 = vst.msk [vmem:[#allocation3 + $0x8] sm:$0xff] %vm212_vm0, %v1102_v0  ;;  %v231_v3 = vld [vmem:[%s1223_s8 + $0x10] sm:$0xff]  ;;  %v302_v4 = vmax.f32 %v229_v1, %v230_v2  ;;  %v253_v5 = vadd.f32 %v230_v2, %v229_v1  ;;  %v232_v6 = vld [vmem:[%s1223_s8 + $0x18] sm:$0xff]  ;;  %v1104_v34 = vmov 0.0|0.0   ;;  %vm1105_vm1 = vmmov 0  }
  0x35   : > { %223 = vst.msk [vmem:[#allocation3 + $0x10] sm:$0xff] %vm212_vm0, %v1102_v0  ;;  %224 = vst.msk [vmem:[#allocation3 + $0x18] sm:$0xff] %vm212_vm0, %v1102_v0  ;;  %v305_v7 = vmax.f32 %v231_v3, %v232_v6  ;;  %v256_v8 = vadd.f32 %v232_v6, %v231_v3  ;;  %v235_v9 = vld [vmem:[%s1223_s8 + $0x30] sm:$0xff]  ;;  %v236_v10 = vld [vmem:[%s1223_s8 + $0x38] sm:$0xff]  ;;  %910 = vmatprep.subr.bf16.mxu1 %v1104_v34  ;;  %898 = vmatprep.subr.bf16.mxu0 %v1104_v34  ;;  %vm370_vm2 = vcmask 523264   ;;  %vm525_vm3 = vcmask 31744  }
  0x36   : > { %225 = vst.msk [vmem:[#allocation3 + $0x20] sm:$0xff] %vm212_vm0, %v1102_v0  ;;  %226 = vst.msk [vmem:[#allocation3 + $0x28] sm:$0xff] %vm212_vm0, %v1102_v0  ;;  %303 = vmax.xlane.f32.xlu1 %v302_v4  ;;  %254 = vadd.xlane.f32.xlu0 %v253_v5  ;;  %v233_v11 = vld [vmem:[%s1223_s8 + $0x20] sm:$0xff]  ;;  %v234_v12 = vld [vmem:[%s1223_s8 + $0x28] sm:$0xff]  ;;  %v262_v13 = vadd.f32 %v236_v10, %v235_v9  ;;  %v311_v16 = vmax.f32 %v235_v9, %v236_v10  ;;  %vm550_vm4 = vcmask 1043456   ;;  %p203_p7 = scmp.lt.s32.totalorder %s1089_s15, 1 }
  0x37   : > { %227 = vst.msk [vmem:[#allocation3 + $0x30] sm:$0xff] %vm212_vm0, %v1102_v0  ;;  %228 = vst.msk [vmem:[#allocation3 + $0x38] sm:$0xff] %vm212_vm0, %v1102_v0  ;;  %v259_v14 = vadd.f32 %v234_v12, %v233_v11  ;;  %v308_v17 = vmax.f32 %v233_v11, %v234_v12  ;;  %v239_v18 = vld [vmem:[%s1223_s8 + $0x50] sm:$0xff]  ;;  %v240_v19 = vld [vmem:[%s1223_s8 + $0x58] sm:$0xff]  ;;  %862 = vmatprep.mubr.msk.f32.mxu0 %vm1105_vm1, %v1103_v15  ;;  %881 = vmatprep.mubr.msk.f32.mxu1 %vm1105_vm1, %v1103_v15 }
  0x38   : > { %213 = vst.msk [vmem:[#allocation2] sm:$0xff] %vm212_vm0, %v1103_v15  ;;  %214 = vst.msk [vmem:[#allocation2 + $0x8] sm:$0xff] %vm212_vm0, %v1103_v15  ;;  %v237_v20 = vld [vmem:[%s1223_s8 + $0x40] sm:$0xff]  ;;  %v238_v21 = vld [vmem:[%s1223_s8 + $0x48] sm:$0xff]  ;;  %v268_v22 = vadd.f32 %v240_v19, %v239_v18  ;;  %v317_v24 = vmax.f32 %v239_v18, %v240_v19  ;;  %s1366_s15 = smov (!%p203_p7, %s1089_s15), 1 }
  0x39   : > { %215 = vst.msk [vmem:[#allocation2 + $0x10] sm:$0xff] %vm212_vm0, %v1103_v15  ;;  %216 = vst.msk [vmem:[#allocation2 + $0x18] sm:$0xff] %vm212_vm0, %v1103_v15  ;;  %v265_v23 = vadd.f32 %v238_v21, %v237_v20  ;;  %v314_v25 = vmax.f32 %v237_v20, %v238_v21  ;;  %v243_v26 = vld [vmem:[%s1223_s8 + $0x70] sm:$0xff]  ;;  %v244_v27 = vld [vmem:[%s1223_s8 + $0x78] sm:$0xff]  ;;  %s818_s4 = sshll.u32 %s1366_s15, 6 }
  0x3a   : > { %306 = vmax.xlane.f32.xlu1 %v305_v7  ;;  %257 = vadd.xlane.f32.xlu0 %v256_v8  ;;  %217 = vst.msk [vmem:[#allocation2 + $0x20] sm:$0xff] %vm212_vm0, %v1103_v15  ;;  %218 = vst.msk [vmem:[#allocation2 + $0x28] sm:$0xff] %vm212_vm0, %v1103_v15  ;;  %v241_v28 = vld [vmem:[%s1223_s8 + $0x60] sm:$0xff]  ;;  %v242_v29 = vld [vmem:[%s1223_s8 + $0x68] sm:$0xff]  ;;  %v274_v30 = vadd.f32 %v244_v27, %v243_v26  ;;  %v323_v32 = vmax.f32 %v243_v26, %v244_v27  ;;  %s207_s30 = scalar_lea.vmem %s1354_s3, %s818_s4 }
  0x3b   : > { %219 = vst.msk [vmem:[#allocation2 + $0x30] sm:$0xff] %vm212_vm0, %v1103_v15  ;;  %220 = vst.msk [vmem:[#allocation2 + $0x38] sm:$0xff] %vm212_vm0, %v1103_v15  ;;  %v271_v31 = vadd.f32 %v242_v29, %v241_v28  ;;  %v320_v33 = vmax.f32 %v241_v28, %v242_v29  ;;  %v294_v35 = vld [vmem:[#allocation3] sm:$0xff]  ;;  %v295_v41 = vld [vmem:[#allocation3 + $0x8] sm:$0xff] }
  0x3c   : > { %v297_v53 = vld [vmem:[#allocation3 + $0x18] sm:$0xff]  ;;  %v296_v54 = vld [vmem:[#allocation3 + $0x10] sm:$0xff] }
  0x3d   : > { %v299_v9 = vld [vmem:[#allocation3 + $0x28] sm:$0xff]  ;;  %v298_v10 = vld [vmem:[#allocation3 + $0x20] sm:$0xff] }
  0x3e   : > { %263 = vadd.xlane.f32.xlu1 %v262_v13  ;;  %260 = vadd.xlane.f32.xlu0 %v259_v14  ;;  %v301_v29 = vld [vmem:[#allocation3 + $0x38] sm:$0xff] }
  0x3f   : > { %v245_v36 = vld [vmem:[#allocation2] sm:$0xff]  ;;  %v246_v42 = vld [vmem:[#allocation2 + $0x8] sm:$0xff] }
  0x40   : > { %v248_v47 = vld [vmem:[#allocation2 + $0x18] sm:$0xff]  ;;  %v247_v48 = vld [vmem:[#allocation2 + $0x10] sm:$0xff] }
  0x41   : > { %v250_v60 = vld [vmem:[#allocation2 + $0x28] sm:$0xff]  ;;  %v249_v61 = vld [vmem:[#allocation2 + $0x20] sm:$0xff] }
  0x42   : > { %312 = vmax.xlane.f32.xlu1 %v311_v16  ;;  %309 = vmax.xlane.f32.xlu0 %v308_v17  ;;  %v252_v20 = vld [vmem:[#allocation2 + $0x38] sm:$0xff]  ;;  %v251_v21 = vld [vmem:[#allocation2 + $0x30] sm:$0xff] }
  0x46   : > { %269 = vadd.xlane.f32.xlu1 %v268_v22  ;;  %266 = vadd.xlane.f32.xlu0 %v265_v23 }
  0x4a   : > { %318 = vmax.xlane.f32.xlu1 %v317_v24  ;;  %315 = vmax.xlane.f32.xlu0 %v314_v25 }
  0x4e   : > { %275 = vadd.xlane.f32.xlu1 %v274_v30  ;;  %272 = vadd.xlane.f32.xlu0 %v271_v31  ;;  %v300_v30 = vld [vmem:[#allocation3 + $0x30] sm:$0xff] }
  0x52   : > { %324 = vmax.xlane.f32.xlu1 %v323_v32  ;;  %321 = vmax.xlane.f32.xlu0 %v320_v33 }
  0xc3   : > { %v304_v37 = vpop.xlane.xlu1 %303  ;;  %v255_v38 = vpop.xlane.xlu0 %254 }
  0xc4   : > { %v326_v39 = vmax.f32 %v294_v35, %v304_v37  ;;  %v277_v40 = vadd.f32 %v255_v38, %v245_v36 }
  0xc6   : > { %334 = vst.msk [vmem:[#allocation3] sm:$0xff] %vm212_vm0, %v326_v39  ;;  %286 = vst.msk [vmem:[#allocation2] sm:$0xff] %vm212_vm0, %v277_v40 }
  0xc7   : > { %v307_v43 = vpop.xlane.xlu1 %306  ;;  %v258_v44 = vpop.xlane.xlu0 %257 }
  0xc8   : > { %v327_v45 = vmax.f32 %v295_v41, %v307_v43  ;;  %v278_v46 = vadd.f32 %v258_v44, %v246_v42 }
  0xca   : > { %335 = vst.msk [vmem:[#allocation3 + $0x8] sm:$0xff] %vm212_vm0, %v327_v45  ;;  %287 = vst.msk [vmem:[#allocation2 + $0x8] sm:$0xff] %vm212_vm0, %v278_v46 }
  0xcb   : > { %v264_v49 = vpop.xlane.xlu1 %263  ;;  %v261_v50 = vpop.xlane.xlu0 %260 }
  0xcc   : > { %v280_v51 = vadd.f32 %v264_v49, %v248_v47  ;;  %v279_v52 = vadd.f32 %v261_v50, %v247_v48 }
  0xcd   : > { %v345_v57 = vld [vmem:[#allocation2] sm:$0xff] }
  0xce   : > { %289 = vst.msk [vmem:[#allocation2 + $0x18] sm:$0xff] %vm212_vm0, %v280_v51  ;;  %288 = vst.msk [vmem:[#allocation2 + $0x10] sm:$0xff] %vm212_vm0, %v279_v52  ;;  %v361_v62 = vld [vmem:[#allocation3] sm:$0xff]  ;;  %v353_v2 = vmul.f32 0.00390625, %v345_v57 }
  0xcf   : > { %v313_v55 = vpop.xlane.xlu1 %312  ;;  %v310_v56 = vpop.xlane.xlu0 %309  ;;  %v369_v52 = vld [vmem:[%s1352_s1] sm:$0xf] }
  0xd0   : > { %v329_v58 = vmax.f32 %v297_v53, %v313_v55  ;;  %v328_v59 = vmax.f32 %v296_v54, %v310_v56  ;;  %v517_v53 = vld [vmem:[%s1353_s2] sm:$0xff] }
  0xd1   : > { %v362_v63 = vld [vmem:[#allocation3 + $0x8] sm:$0xff] }
  0xd2   : > { %v346_v0 = vld [vmem:[#allocation2 + $0x8] sm:$0xff]  ;;  %337 = vst.msk [vmem:[#allocation3 + $0x18] sm:$0xff] %vm212_vm0, %v329_v58  ;;  %336 = vst.msk [vmem:[#allocation3 + $0x10] sm:$0xff] %vm212_vm0, %v328_v59  ;;  %v911_v1 = vpack.c.bf16 %v362_v63, %v361_v62  ;;  %v519_v63 = vld [vmem:[%s1353_s2 + $0x10] sm:$0xff] }
  0xd3   : > { %v354_v3 = vmul.f32 0.00390625, %v346_v0  ;;  %v270_v4 = vpop.xlane.xlu1 %269  ;;  %v267_v5 = vpop.xlane.xlu0 %266  ;;  %v522_v62 = vld [vmem:[%s1353_s2 + $0x28] sm:$0xff]  ;;  %v523_v0 = vld [vmem:[%s1353_s2 + $0x30] sm:$0xff] }
  0xd4   : > { %v282_v6 = vadd.f32 %v270_v4, %v250_v60  ;;  %v281_v7 = vadd.f32 %v267_v5, %v249_v61  ;;  %912 = vmatpush3.bf16.msra.mxu1 %v911_v1  ;;  %v518_v61 = vld [vmem:[%s1353_s2 + $0x8] sm:$0xff]  ;;  %v520_v1 = vld [vmem:[%s1353_s2 + $0x18] sm:$0xff] }
  0xd5   : > { %v899_v8 = vpack.c.bf16 %v354_v3, %v353_v2  ;;  %v347_v11 = vld [vmem:[#allocation2 + $0x10] sm:$0xff]  ;;  %v348_v12 = vld [vmem:[#allocation2 + $0x18] sm:$0xff]  ;;  %913 = vmatprep.subr.bf16.mxu1 %v1104_v34 }
  0xd6   : > { %291 = vst.msk [vmem:[#allocation2 + $0x28] sm:$0xff] %vm212_vm0, %v282_v6  ;;  %290 = vst.msk [vmem:[#allocation2 + $0x20] sm:$0xff] %vm212_vm0, %v281_v7  ;;  %v355_v13 = vmul.f32 0.00390625, %v347_v11  ;;  %v356_v14 = vmul.f32 0.00390625, %v348_v12  ;;  %v524_v2 = vld [vmem:[%s1353_s2 + $0x38] sm:$0xff] }
  0xd7   : > { %900 = vmatpush3.bf16.msra.mxu0 %v899_v8  ;;  %v319_v15 = vpop.xlane.xlu1 %318  ;;  %v316_v16 = vpop.xlane.xlu0 %315 }
  0xd8   : > { %901 = vmatprep.subr.bf16.mxu0 %v1104_v34  ;;  %v331_v17 = vmax.f32 %v299_v9, %v319_v15  ;;  %v330_v18 = vmax.f32 %v298_v10, %v316_v16  ;;  %v902_v19 = vpack.c.bf16 %v356_v14, %v355_v13 }
  0xd9   : > { %v363_v22 = vld [vmem:[#allocation3 + $0x10] sm:$0xff]  ;;  %v364_v23 = vld [vmem:[#allocation3 + $0x18] sm:$0xff] }
  0xda   : > { %339 = vst.msk [vmem:[#allocation3 + $0x28] sm:$0xff] %vm212_vm0, %v331_v17  ;;  %338 = vst.msk [vmem:[#allocation3 + $0x20] sm:$0xff] %vm212_vm0, %v330_v18  ;;  %v914_v24 = vpack.c.bf16 %v364_v23, %v363_v22 }
  0xdb   : > { %903 = vmatpush3.bf16.msra.mxu0 %v902_v19  ;;  %v276_v25 = vpop.xlane.xlu1 %275  ;;  %v273_v26 = vpop.xlane.xlu0 %272 }
  0xdc   : > { %904 = vmatprep.subr.bf16.mxu0 %v1104_v34  ;;  %v284_v27 = vadd.f32 %v276_v25, %v252_v20  ;;  %v283_v28 = vadd.f32 %v273_v26, %v251_v21  ;;  %915 = vmatpush3.bf16.msra.mxu1 %v914_v24 }
  0xdd   : > { %v349_v31 = vld [vmem:[#allocation2 + $0x20] sm:$0xff]  ;;  %v350_v32 = vld [vmem:[#allocation2 + $0x28] sm:$0xff]  ;;  %916 = vmatprep.subr.bf16.mxu1 %v1104_v34 }
  0xde   : > { %293 = vst.msk [vmem:[#allocation2 + $0x38] sm:$0xff] %vm212_vm0, %v284_v27  ;;  %292 = vst.msk [vmem:[#allocation2 + $0x30] sm:$0xff] %vm212_vm0, %v283_v28  ;;  %v357_v33 = vmul.f32 0.00390625, %v349_v31  ;;  %v358_v35 = vmul.f32 0.00390625, %v350_v32 }
  0xdf   : > { %v325_v36 = vpop.xlane.xlu1 %324  ;;  %v322_v37 = vpop.xlane.xlu0 %321 }
  0xe0   : > { %v333_v38 = vmax.f32 %v301_v29, %v325_v36  ;;  %v332_v39 = vmax.f32 %v300_v30, %v322_v37  ;;  %v905_v40 = vpack.c.bf16 %v358_v35, %v357_v33 }
  0xe1   : > { %v365_v41 = vld [vmem:[#allocation3 + $0x20] sm:$0xff]  ;;  %v366_v42 = vld [vmem:[#allocation3 + $0x28] sm:$0xff] }
  0xe2   : > { %341 = vst.msk [vmem:[#allocation3 + $0x38] sm:$0xff] %vm212_vm0, %v333_v38  ;;  %340 = vst.msk [vmem:[#allocation3 + $0x30] sm:$0xff] %vm212_vm0, %v332_v39  ;;  %906 = vmatpush3.bf16.msra.mxu0 %v905_v40  ;;  %v917_v43 = vpack.c.bf16 %v366_v42, %v365_v41 }
  0xe3   : > { %907 = vmatprep.subr.bf16.mxu0 %v1104_v34 }
  0xe4   : > { %918 = vmatpush3.bf16.msra.mxu1 %v917_v43 }
  0xe5   : > { %v351_v44 = vld [vmem:[#allocation2 + $0x30] sm:$0xff]  ;;  %v352_v45 = vld [vmem:[#allocation2 + $0x38] sm:$0xff]  ;;  %919 = vmatprep.subr.bf16.mxu1 %v1104_v34  ;;  %v521_v34 = vld [vmem:[%s1353_s2 + $0x20] sm:$0xff] }
  0xe6   : > { %v359_v46 = vmul.f32 0.00390625, %v351_v44  ;;  %v360_v47 = vmul.f32 0.00390625, %v352_v45 }
  0xe8   : > { %v908_v48 = vpack.c.bf16 %v360_v47, %v359_v46 }
  0xe9   : > { %v367_v49 = vld [vmem:[#allocation3 + $0x30] sm:$0xff]  ;;  %v368_v50 = vld [vmem:[#allocation3 + $0x38] sm:$0xff] }
  0xea   : > { %909 = vmatpush3.bf16.msra.mxu0 %v908_v48  ;;  %v920_v51 = vpack.c.bf16 %v368_v50, %v367_v49 }
  0xec   : > { %921 = vmatpush3.bf16.msra.mxu1 %v920_v51 }
  0xed   : > { %863 = vmatmul.mubr.msk.f32.vlgmr.msra.gmra.mrb[0].mxu0 %vm370_vm2, %v369_v52 }
  0xee   : > { %886 = vmatprep.mubr.msk.f32.mxu0 %vm525_vm3, %v517_v53 }
  0xef   : > { %882 = vmatmul.mubr.msk.f32.vlgmr.msra.gmra.mrb[0].mxu1 %vm370_vm2, %v369_v52 }
  0xf0   : > { %892 = vmatprep.mubr.msk.f32.mxu1 %vm525_vm3, %v521_v34 }
 0x1c0   : > { %v440_v54 = vpop.f32.mrb[0].mxu0 }
 0x1c1   : > { %v444_v55 = vmax.f32 %v440_v54, 0.0  ;;  %v864_v56 = vpop.f32.mrb[1].mxu0 }
 0x1c2   : > { %v511_v57 = vpop.f32.mrb[0].mxu1 }
 0x1c3   : > { %v515_v58 = vmax.f32 %v511_v57, 0.0  ;;  %v883_v59 = vpop.f32.mrb[1].mxu1 }
 0x1c5   : > { %v516_v60 = vadd.f32 %v515_v58, %v444_v55 }
 0x1c7   : > { %884 = vmatprep.subr.msk.mxu0 %vm550_vm4, %v516_v60  ;;  %922 = vmatprep.subr.msk.mxu1 %vm550_vm4, %v516_v60 }
 0x1c8   : > { %885 = vmatpush3.msk.msra.mxu0 %vm550_vm4, %v516_v60  ;;  %923 = vmatpush3.msk.msra.mxu1 %vm550_vm4, %v516_v60 }
 0x1c9   : > { %887 = vmatmul.mubr.msk.f32.vlgmr.msra.gmra.mrb[2].mxu0 %vm525_vm3, %v518_v61  ;;  %893 = vmatmul.mubr.msk.f32.vlgmr.msra.gmra.mrb[2].mxu1 %vm525_vm3, %v522_v62 }
 0x1ca   : > { %889 = vmatprep.mubr.msk.f32.mxu0 %vm525_vm3, %v519_v63  ;;  %895 = vmatprep.mubr.msk.f32.mxu1 %vm525_vm3, %v523_v0 }
 0x1cd   : > { %890 = vmatmul.mubr.msk.f32.gmra.mrb[4].mxu0 %vm525_vm3, %v520_v1  ;;  %896 = vmatmul.mubr.msk.f32.gmra.mrb[4].mxu1 %vm525_vm3, %v524_v2 }
 0x29c   : > { %v888_v3 = vpop.f32.mrb[2].mxu0  ;;  %v894_v4 = vpop.f32.mrb[2].mxu1 }
 0x29d   : > { %v660_v5 = vsub.f32 0.0, %v888_v3  ;;  %v664_v6 = vsub.f32 0.0, %v894_v4  ;;  %v620_v7 = vpop.f32.mrb[3].mxu0  ;;  %v640_v8 = vpop.f32.mrb[3].mxu1 }
 0x29e   : > { %v659_v9 = vsub.f32 0.0, %v620_v7  ;;  %v663_v10 = vsub.f32 0.0, %v640_v8 }
 0x29f   : > { %v669_v11 = vmul.f32 1.442695, %v660_v5  ;;  %v677_v12 = vmul.f32 1.442695, %v664_v6 }
 0x2a0   : > { %v667_v13 = vmul.f32 1.442695, %v659_v9  ;;  %v675_v14 = vmul.f32 1.442695, %v663_v10  ;;  %v891_v15 = vpop.f32.mrb[4].mxu0  ;;  %v897_v16 = vpop.f32.mrb[4].mxu1 }
 0x2a1   : > { %985 = vpow2.f32 %v669_v11  ;;  %v662_v17 = vsub.f32 0.0, %v891_v15  ;;  %v666_v18 = vsub.f32 0.0, %v897_v16  ;;  %v630_v19 = vpop.f32.mrb[5].mxu0  ;;  %v650_v20 = vpop.f32.mrb[5].mxu1 }
 0x2a2   : > { %987 = vpow2.f32 %v677_v12  ;;  %v661_v21 = vsub.f32 0.0, %v630_v19  ;;  %v665_v22 = vsub.f32 0.0, %v650_v20 }
 0x2a3   : > { %989 = vpow2.f32 %v667_v13  ;;  %v673_v23 = vmul.f32 1.442695, %v662_v17  ;;  %v681_v24 = vmul.f32 1.442695, %v666_v18 }
 0x2a4   : > { %991 = vpow2.f32 %v675_v14  ;;  %v671_v25 = vmul.f32 1.442695, %v661_v21  ;;  %v679_v26 = vmul.f32 1.442695, %v665_v22 }
 0x2a5   : > { %993 = vpow2.f32 %v673_v23 }
 0x2a6   : > { %995 = vpow2.f32 %v681_v24 }
 0x2a7   : > { %997 = vpow2.f32 %v671_v25 }
 0x2a8   : > { %999 = vpow2.f32 %v679_v26 }
 0x2ab   : > { %v986_v27 = vpop.eup %985 }
 0x2ac   : > { %v988_v28 = vpop.eup %987  ;;  %v684_v29 = vadd.f32 1.0, %v986_v27 }
 0x2ad   : > { %v990_v30 = vpop.eup %989  ;;  %v688_v31 = vadd.f32 1.0, %v988_v28 }
 0x2ae   : > { %v992_v32 = vpop.eup %991  ;;  %1001 = vrcp.f32 %v684_v29  ;;  %v683_v33 = vadd.f32 1.0, %v990_v30 }
 0x2af   : > { %v994_v35 = vpop.eup %993  ;;  %1003 = vrcp.f32 %v688_v31  ;;  %v687_v36 = vadd.f32 1.0, %v992_v32 }
 0x2b0   : > { %v996_v37 = vpop.eup %995  ;;  %1005 = vrcp.f32 %v683_v33  ;;  %v686_v38 = vadd.f32 1.0, %v994_v35 }
 0x2b1   : > { %v998_v39 = vpop.eup %997  ;;  %1007 = vrcp.f32 %v687_v36  ;;  %v690_v40 = vadd.f32 1.0, %v996_v37 }
 0x2b2   : > { %v1000_v41 = vpop.eup %999  ;;  %1009 = vrcp.f32 %v686_v38  ;;  %v685_v42 = vadd.f32 1.0, %v998_v39 }
 0x2b3   : > { %1011 = vrcp.f32 %v690_v40  ;;  %v689_v43 = vadd.f32 1.0, %v1000_v41 }
 0x2b4   : > { %1013 = vrcp.f32 %v685_v42 }
 0x2b5   : > { %1015 = vrcp.f32 %v689_v43 }
 0x2b8   : > { %v1002_v44 = vpop.eup %1001 }
 0x2b9   : > { %v1004_v45 = vpop.eup %1003  ;;  %708 = vst.msk [vmem:[%s207_s30 + $0x8] sm:$0xff] %vm212_vm0, %v1002_v44 }
 0x2ba   : > { %v1006_v46 = vpop.eup %1005  ;;  %712 = vst.msk [vmem:[%s207_s30 + $0x28] sm:$0xff] %vm212_vm0, %v1004_v45 }
 0x2bb   : > { %v1008_v47 = vpop.eup %1007  ;;  %707 = vst.msk [vmem:[%s207_s30] sm:$0xff] %vm212_vm0, %v1006_v46 }
 0x2bc   : > { %v1010_v48 = vpop.eup %1009  ;;  %711 = vst.msk [vmem:[%s207_s30 + $0x20] sm:$0xff] %vm212_vm0, %v1008_v47 }
 0x2bd   : > { %v1012_v49 = vpop.eup %1011  ;;  %710 = vst.msk [vmem:[%s207_s30 + $0x18] sm:$0xff] %vm212_vm0, %v1010_v48 }
 0x2be   : > { %v1014_v50 = vpop.eup %1013  ;;  %714 = vst.msk [vmem:[%s207_s30 + $0x38] sm:$0xff] %vm212_vm0, %v1012_v49 }
 0x2bf   : > { %v1016_v51 = vpop.eup %1015  ;;  %709 = vst.msk [vmem:[%s207_s30 + $0x10] sm:$0xff] %vm212_vm0, %v1014_v50 }
 0x2c0   : > { %713 = vst.msk [vmem:[%s207_s30 + $0x30] sm:$0xff] %vm212_vm0, %v1016_v51 }
 0x2c1 PF: > { %s16_s17 = sadd.s32 1, %s1097_s17   ;;  %s1358_s12 = smov %s1081_s13 }
 0x2c2   : > { %p13_p9 = scmp.ge.s32.totalorder %s16_s17, 4   ;;  %s1359_s13 = smov %s1085_s14 }
 0x2c3   : > { %s1360_s14 = smov %s1175_s24  ;;  %s1361_s15 = smov %s1093_s16 }
 0x2c4   : > { %s1362_s16 = smov %s1364_s19  ;;  %15 = sbr.rel (!%p13_p9) target bundleno = 4 (0x4), region = 80 }
 0x2cb   :  { %736 = vsyncpa [#allocation5], 1 }
 0x2cc   :  { %738 = vsyncpa [#allocation5 + $0x1], 1 }

</bundles_post_ra>
